<compile_context>
chip_gen: v6e
topology: v6e:2x2x1
jax: 0.10.0
libtpu: 0.0.40
codegen_flags: <defaults>
</compile_context>

<pallas_src>
import jax
import jax.numpy as jnp
from jax.experimental import pallas as pl
from jax.experimental.pallas import tpu as pltpu


def _make_pool_kernel(hw_total: int, tile: int, need_mask: bool):
    """Builds the pooling kernel with the true spatial size baked in."""

    def kernel(x_ref, o_ref, sum_acc, max_acc):
        # x_ref:   (Bb, C, T)      one batch block, one spatial tile
        # o_ref:   (Bb, C, 2) f32  [:, :, 0] = mean over HW, [:, :, 1] = max
        # sum_acc: (Bb, C, 1) f32  running sum
        # max_acc: (Bb, C, 1)      running max (exact in the input dtype)
        k = pl.program_id(1)
        nk = pl.num_programs(1)

        @pl.when(k == 0)
        def _init():
            sum_acc[...] = jnp.zeros_like(sum_acc)
            max_acc[...] = jnp.full_like(max_acc, -jnp.inf)

        def accumulate_full():
            x = x_ref[...]
            sum_acc[...] = sum_acc[...] + jnp.sum(
                x.astype(jnp.float32), axis=-1, keepdims=True)
            max_acc[...] = jnp.maximum(
                max_acc[...], jnp.max(x, axis=-1, keepdims=True))

        if need_mask:
            # Only the final (partial) tile pays for iota / compare / select.
            @pl.when(k < nk - 1)
            def _body():
                accumulate_full()

            @pl.when(k == nk - 1)
            def _tail():
                x = x_ref[...]
                lane = jax.lax.broadcasted_iota(jnp.int32, x.shape, 2)
                valid = (k * tile + lane) < hw_total
                xs = jnp.where(valid, x, 0.0).astype(jnp.float32)
                xm = jnp.where(valid, x, -jnp.inf)
                sum_acc[...] = sum_acc[...] + jnp.sum(
                    xs, axis=-1, keepdims=True)
                max_acc[...] = jnp.maximum(
                    max_acc[...], jnp.max(xm, axis=-1, keepdims=True))
        else:
            accumulate_full()

        @pl.when(k == nk - 1)
        def _finalize():
            avg = sum_acc[...] * (1.0 / hw_total)              # (Bb, C, 1) f32
            mx = max_acc[...].astype(jnp.float32)              # (Bb, C, 1) f32
            o_ref[...] = jnp.concatenate([avg, mx], axis=-1)   # (Bb, C, 2)

    return kernel


def _tile_budget_bytes():
    """Generation-aware per-block byte budget for the x tile."""
    try:
        info = pltpu.get_tpu_info()
        vmem = getattr(info, "vmem_capacity_bytes", None)
    except Exception:
        vmem = None
    if vmem is not None and vmem >= 100 * 1024 * 1024:
        return 6 << 20     # v5e / v6e: 128 MiB VMEM -> larger tiles
    return 2 << 20         # v7x (64 MiB / TC) or unknown: stay conservative


def _pick_batch_block(batch, per_batch_bytes, budget):
    """Largest divisor of `batch` (<= 8) whose block fits the byte budget,
    while keeping >= 2 grid steps when possible so both v7x TCs get work."""
    best = 1
    for d in range(1, batch + 1):
        if batch % d == 0 and d <= 8 and d * per_batch_bytes <= budget:
            best = d
    while best > 1 and batch // best < 2:
        best = max(d for d in range(1, best) if batch % d == 0)
    return best


def channel_attention_pool(x, *, max_block_bytes=None):
    """x: (B, C, HW). Returns (B, C, 2) f32 with [mean, max] over HW."""
    B, C, HW = x.shape
    itemsize = jnp.dtype(x.dtype).itemsize
    budget = max_block_bytes if max_block_bytes is not None else _tile_budget_bytes()

    per_batch_bytes = C * HW * itemsize
    if per_batch_bytes <= budget:
        # Single spatial tile; block multiple batch rows per step.
        tile = HW
        need_mask = False
        bb = _pick_batch_block(B, per_batch_bytes, budget)
    else:
        # Stream the spatial axis in 128-lane-aligned tiles.
        bb = 1
        tile = max(128, (budget // (C * itemsize)) // 128 * 128)
        need_mask = (HW % tile) != 0

    n_tiles = pl.cdiv(HW, tile)
    grid = (B // bb, n_tiles)
    kernel = _make_pool_kernel(HW, tile, need_mask)

    # This op is HBM-bandwidth bound: tell XLA's scheduler.
    cost = pl.CostEstimate(
        flops=2 * B * C * HW,
        transcendentals=0,
        bytes_accessed=B * C * HW * itemsize + B * C * 2 * 4,
    )

    return pl.pallas_call(
        kernel,
        out_shape=jax.ShapeDtypeStruct((B, C, 2), jnp.float32),
        grid_spec=pltpu.PrefetchScalarGridSpec(
            num_scalar_prefetch=0,
            grid=grid,
            in_specs=[pl.BlockSpec((bb, C, tile), lambda b, k: (b, 0, k))],
            out_specs=pl.BlockSpec((bb, C, 2), lambda b, k: (b, 0, 0)),
            scratch_shapes=[
                pltpu.VMEM((bb, C, 1), jnp.float32),   # running sum (f32)
                pltpu.VMEM((bb, C, 1), x.dtype),       # running max (exact)
            ],
        ),
        compiler_params=pltpu.CompilerParams(
            dimension_semantics=("parallel", "arbitrary"),
            vmem_limit_bytes=32 * 1024 * 1024,
        ),
        cost_estimate=cost,
    )(x)


def channel_attention(x_nchw, w1, w2, *, max_block_bytes=None):
    """x_nchw: (B, C, H, W); w1: (C//ratio, C); w2: (C, C//ratio).
    Returns (B, C, 1, 1), matching the PyTorch module."""
    B, C, H, W = x_nchw.shape

    # Pallas kernel: global avg + max pooling over H*W (the heavy part).
    pooled = channel_attention_pool(
        x_nchw.reshape(B, C, H * W), max_block_bytes=max_block_bytes)
    avg = pooled[..., 0]                      # (B, C) f32
    mx = pooled[..., 1]                       # (B, C) f32

    # Tiny shared MLP + sigmoid on (B, C) vectors: done in plain XLA per the
    # perf review (keeps constant weights out of the kernel's VMEM).
    w1f = w1.astype(jnp.float32)              # (Cr, C)
    w2f = w2.astype(jnp.float32)              # (C, Cr)

    def mlp(v):
        h = jnp.maximum(v @ w1f.T, 0.0)
        return h @ w2f.T

    gate = jax.nn.sigmoid(mlp(avg) + mlp(mx))
    return gate.astype(x_nchw.dtype).reshape(B, C, 1, 1)


def reference(x_nchw, w1, w2):
    # Pure-JAX reference of the PyTorch forward.
    avg = jnp.mean(x_nchw, axis=(2, 3))       # (B, C)
    mxv = jnp.max(x_nchw, axis=(2, 3))        # (B, C)

    def mlp(v):
        h = jnp.maximum(v @ w1.T, 0.0)
        return h @ w2.T

    out = jax.nn.sigmoid(mlp(avg) + mlp(mxv))
    return out.reshape(*out.shape, 1, 1)


if __name__ == "__main__":
    key = jax.random.PRNGKey(0)
    B, C, H, W = 2, 64, 16, 16
    ratio = 16
    Cr = C // ratio  # 4

    kx, k1, k2, kx2, kx3 = jax.random.split(key, 5)
    x = jax.random.normal(kx, (B, C, H, W), dtype=jnp.float32)

    # Deterministic kaiming-uniform-like init for the two 1x1 conv weights.
    bound1 = (1.0 / C) ** 0.5
    bound2 = (1.0 / Cr) ** 0.5
    w1 = jax.random.uniform(k1, (Cr, C), jnp.float32, -bound1, bound1)
    w2 = jax.random.uniform(k2, (C, Cr), jnp.float32, -bound2, bound2)

    # Check 1: small shape, single spatial tile.
    out = jax.block_until_ready(channel_attention(x, w1, w2))
    ref = reference(x, w1, w2)
    assert out.shape == (B, C, 1, 1), out.shape
    assert jnp.allclose(out, ref, atol=1e-5, rtol=1e-5), float(
        jnp.max(jnp.abs(out - ref)))

    # Check 2: larger spatial with a small tile budget so the HW axis is
    # streamed over multiple tiles, including a masked partial final tile
    # (exercises the pl.when-gated tail path).
    x2 = jax.random.normal(kx2, (B, C, 24, 24), dtype=jnp.float32)  # HW=576
    out2 = jax.block_until_ready(
        channel_attention(x2, w1, w2, max_block_bytes=C * 4 * 256))  # T=256 -> 3 tiles
    ref2 = reference(x2, w1, w2)
    assert jnp.allclose(out2, ref2, atol=1e-5, rtol=1e-5), float(
        jnp.max(jnp.abs(out2 - ref2)))

    # Check 3: B=4 with tiny HW so several batch rows are blocked per grid
    # step (exercises the batch-blocked single-tile path).
    x3 = jax.random.normal(kx3, (4, C, 8, 8), dtype=jnp.float32)
    out3 = jax.block_until_ready(channel_attention(x3, w1, w2))
    ref3 = reference(x3, w1, w2)
    assert jnp.allclose(out3, ref3, atol=1e-5, rtol=1e-5), float(
        jnp.max(jnp.abs(out3 - ref3)))

    print("KERNEL_OK")
</pallas_src>

<mosaic_0001>
module attributes {stable_mosaic.version = 11 : i64} {
  func.func @kernel(%arg0: i32, %arg1: i32, %arg2: memref<1x64x256xf32, #tpu.memory_space<vmem>>, %arg3: memref<1x64x2xf32, #tpu.memory_space<vmem>>, %arg4: memref<1x64x1xf32, #tpu.memory_space<vmem>>, %arg5: memref<1x64x1xf32, #tpu.memory_space<vmem>>) attributes {dimension_semantics = [#tpu.dimension_semantics<parallel>, #tpu.dimension_semantics<arbitrary>], iteration_bounds = array<i64: 2, 1>, scalar_prefetch = 0 : i64, scratch_operands = 2 : i64, tpu.core_type = #tpu.core_type<tc>, window_params = [{transform_indices = @transform_0, window_bounds = array<i64: 1, 64, 256>}, {transform_indices = @transform_1, window_bounds = array<i64: 1, 64, 2>}]} {
    %c0_i32 = arith.constant 0 : i32
    %0 = arith.cmpi eq, %arg1, %c0_i32 : i32
    %1 = arith.extui %0 : i1 to i32
    %c0_i32_0 = arith.constant 0 : i32
    %2 = arith.cmpi ne, %1, %c0_i32_0 : i32
    scf.if %2 {
      %cst_18 = arith.constant 0.000000e+00 : f32
      %17 = vector.broadcast %cst_18 : f32 to vector<1x64x1xf32>
      %c0_19 = arith.constant 0 : index
      %c0_20 = arith.constant 0 : index
      %c0_21 = arith.constant 0 : index
      %18 = vector.load %arg4[%c0_19, %c0_20, %c0_21] : memref<1x64x1xf32, #tpu.memory_space<vmem>>, vector<1x64x1xf32>
      tpu.vector_store %arg4[%c0_19, %c0_20, %c0_21], %17 {strides = array<i32>} : memref<1x64x1xf32, #tpu.memory_space<vmem>>, vector<1x64x1xf32>,
      %cst_22 = arith.constant 0xFF800000 : f32
      %19 = vector.broadcast %cst_22 : f32 to vector<1x64x1xf32>
      %c0_23 = arith.constant 0 : index
      %c0_24 = arith.constant 0 : index
      %c0_25 = arith.constant 0 : index
      %20 = vector.load %arg5[%c0_23, %c0_24, %c0_25] : memref<1x64x1xf32, #tpu.memory_space<vmem>>, vector<1x64x1xf32>
      tpu.vector_store %arg5[%c0_23, %c0_24, %c0_25], %19 {strides = array<i32>} : memref<1x64x1xf32, #tpu.memory_space<vmem>>, vector<1x64x1xf32>,
    } else {
    }
    %c0 = arith.constant 0 : index
    %c0_1 = arith.constant 0 : index
    %c0_2 = arith.constant 0 : index
    %3 = vector.load %arg2[%c0, %c0_1, %c0_2] : memref<1x64x256xf32, #tpu.memory_space<vmem>>, vector<1x64x256xf32>
    %c0_3 = arith.constant 0 : index
    %c0_4 = arith.constant 0 : index
    %c0_5 = arith.constant 0 : index
    %4 = vector.load %arg4[%c0_3, %c0_4, %c0_5] : memref<1x64x1xf32, #tpu.memory_space<vmem>>, vector<1x64x1xf32>
    %cst = arith.constant dense<0.000000e+00> : vector<1x64xf32>
    %5 = vector.multi_reduction <add>, %3, %cst [2] : vector<1x64x256xf32> to vector<1x64xf32>
    %6 = vector.shape_cast %5 : vector<1x64xf32> to vector<1x64x1xf32>
    %7 = arith.addf %4, %6 : vector<1x64x1xf32>
    %c0_6 = arith.constant 0 : index
    %c0_7 = arith.constant 0 : index
    %c0_8 = arith.constant 0 : index
    %8 = vector.load %arg4[%c0_6, %c0_7, %c0_8] : memref<1x64x1xf32, #tpu.memory_space<vmem>>, vector<1x64x1xf32>
    tpu.vector_store %arg4[%c0_6, %c0_7, %c0_8], %7 {strides = array<i32>} : memref<1x64x1xf32, #tpu.memory_space<vmem>>, vector<1x64x1xf32>,
    %c0_9 = arith.constant 0 : index
    %c0_10 = arith.constant 0 : index
    %c0_11 = arith.constant 0 : index
    %9 = vector.load %arg5[%c0_9, %c0_10, %c0_11] : memref<1x64x1xf32, #tpu.memory_space<vmem>>, vector<1x64x1xf32>
    %cst_12 = arith.constant dense<0xFF800000> : vector<1x64xf32>
    %10 = vector.multi_reduction <maximumf>, %3, %cst_12 [2] : vector<1x64x256xf32> to vector<1x64xf32>
    %11 = vector.shape_cast %10 : vector<1x64xf32> to vector<1x64x1xf32>
    %12 = arith.maximumf %9, %11 : vector<1x64x1xf32>
    %c0_13 = arith.constant 0 : index
    %c0_14 = arith.constant 0 : index
    %c0_15 = arith.constant 0 : index
    %13 = vector.load %arg5[%c0_13, %c0_14, %c0_15] : memref<1x64x1xf32, #tpu.memory_space<vmem>>, vector<1x64x1xf32>
    tpu.vector_store %arg5[%c0_13, %c0_14, %c0_15], %12 {strides = array<i32>} : memref<1x64x1xf32, #tpu.memory_space<vmem>>, vector<1x64x1xf32>,
    %c0_i32_16 = arith.constant 0 : i32
    %14 = arith.cmpi eq, %arg1, %c0_i32_16 : i32
    %15 = arith.extui %14 : i1 to i32
    %c0_i32_17 = arith.constant 0 : i32
    %16 = arith.cmpi ne, %15, %c0_i32_17 : i32
    scf.if %16 {
      %c0_18 = arith.constant 0 : index
      %c0_19 = arith.constant 0 : index
      %c0_20 = arith.constant 0 : index
      %17 = vector.load %arg4[%c0_18, %c0_19, %c0_20] : memref<1x64x1xf32, #tpu.memory_space<vmem>>, vector<1x64x1xf32>
      %cst_21 = arith.constant 3.906250e-03 : f32
      %18 = vector.broadcast %cst_21 : f32 to vector<1x64x1xf32>
      %19 = arith.mulf %17, %18 : vector<1x64x1xf32>
      %c0_22 = arith.constant 0 : index
      %c0_23 = arith.constant 0 : index
      %c0_24 = arith.constant 0 : index
      %20 = vector.load %arg5[%c0_22, %c0_23, %c0_24] : memref<1x64x1xf32, #tpu.memory_space<vmem>>, vector<1x64x1xf32>
      %21 = tpu.concatenate %19, %20 in 2 : vector<1x64x1xf32>, vector<1x64x1xf32> -> vector<1x64x2xf32>
      %c0_25 = arith.constant 0 : index
      %c0_26 = arith.constant 0 : index
      %c0_27 = arith.constant 0 : index
      %22 = vector.load %arg3[%c0_25, %c0_26, %c0_27] : memref<1x64x2xf32, #tpu.memory_space<vmem>>, vector<1x64x2xf32>
      tpu.vector_store %arg3[%c0_25, %c0_26, %c0_27], %21 {strides = array<i32>} : memref<1x64x2xf32, #tpu.memory_space<vmem>>, vector<1x64x2xf32>,
    } else {
    }
    return
  }
  func.func @transform_0(%arg0: i32, %arg1: i32) -> (i32, i32, i32) {
    %c0_i32 = arith.constant 0 : i32
    %c0_i32_0 = arith.constant 0 : i32
    return %arg0, %c0_i32, %arg1 : i32, i32, i32
  }
  func.func @transform_1(%arg0: i32, %arg1: i32) -> (i32, i32, i32) {
    %c0_i32 = arith.constant 0 : i32
    %c0_i32_0 = arith.constant 0 : i32
    %c0_i32_1 = arith.constant 0 : i32
    return %arg0, %c0_i32, %c0_i32_0 : i32, i32, i32
  }
}

</mosaic_0001>

<bundles_post_ra>
// kernel: tpu_custom_call.1
= control target key start
LH: loop header
LB: loop body
LE: loop exit
PB: predicated region body
PF: predicated region fallthrough
CT: control target
= control target key end

     0   :  { %6 = vsyncpa [#allocation5], 0  ;;  %s793_s0 = inlined_call_operand.hbm [shape: f32[2,64,256], index: 0, kind: input, shape index: {}]   ;;  %s794_s1 = inlined_call_operand.vmem [shape: f32[2,64,2], index: 1, kind: output, shape index: {}]  }
   0x1   :  { %8 = vsyncpa [#allocation5 + $0x1], 0  ;;  %s613_s6 = smov 0   ;;  %s615_s7 = smov 0  }
   0x2   :  { %s617_s8 = smov 0   ;;  %s619_s9 = smov 0  }
   0x3   :  { %s621_s10 = smov 0   ;;  %s623_s11 = smov 0  }
   0x4 LB: > { %s442_s12 = sadd.s32 4294967295, %s595_s11   ;;  %s26_s13 = sadd.s32 1, %s591_s10  ;;  %s595_s11 = sphi %s623_s11, %s14_s11   ;;  %s591_s10 = sphi %s621_s10, %s802_s10   ;;  %s587_s9 = sphi %s619_s9, %s801_s9   ;;  %s583_s8 = sphi %s617_s8, %s800_s8   ;;  %s579_s7 = sphi %s615_s7, %s799_s7   ;;  %s575_s6 = sphi %s613_s6, %s798_s6  }
   0x5   : > { %p28_p0 = scmp.ge.s32.totalorder %s26_s13, 2  ;;  %s35_s14 = sadd.s32 1, %s583_s8 }
   0x6   : > { %p42_p1 = scmp.ne.s32.totalorder %s583_s8, %s579_s7  ;;  %p43_p2 = scmp.eq.s32.totalorder %s595_s11, 0 }
   0x7   : > { %s804_s13 = smov (%p28_p0, %s26_s13), 0  ;;  %p48_p4 = scmp.ne.s32.totalorder %s579_s7, %s575_s6 }
   0x8   : > { %p649_p3 = por %p43_p2, %p42_p1  ;;  %s30_s16 = ssub.s32 %s591_s10, %s804_s13 }
   0x9   : > { %p49_p5 = scmp.eq.s32.totalorder %s442_s12, 0  ;;  %p33_p6 = scmp.eq.s32.totalorder %s30_s16, 0 }
   0xa   : > { %p463_p8 = scmp.lt.s32.totalorder %s595_s11, 2  ;;  %s98_s19 = sand.u32 1, %s583_s8  }
   0xb   : > { %p656_p7 = por %p49_p5, %p48_p4  ;;  %s455_s20 = sshll.u32 %s591_s10, 11 }
   0xc   : > { %s662_s18 = scalar_select %p33_p6, %s583_s8, %s35_s14  }
   0xd   : > { %s446_s21 = sshll.u32 %s98_s19, 7  ;;  %s110_s24 = scalar_lea.hbm %s793_s0, %s455_s20 }
   0xe   : > { %s102_s25 = scalar_lea.vmem [#allocation4], %s446_s21  ;;  %p671_p9 = pnand %p463_p8, %p649_p3 }
   0xf   : > { %s111_s26 = sshll.u32 %s102_s25, 4  ;;  %s99_s28 = scalar_lea.sflag [#allocation5], %s98_s19  ;;  %s112_s26 = int_to_ptr.vmem [resolvable:$true] %s111_s26 }
  0x10   : > { %p519_p10 = pneg %p671_p9  ;;  %s530_s29 = scalar_lea.vmem %s112_s26, 2048 }
  0x11   : > { %p531_p11 = scmp.ne.s32.totalorder %s112_s26, %s530_s29  ;;  %s597_s30 = smov [#allocation4]  }
  0x12   : > { %s535_s2 = sshll.u32 %s597_s30, 4  ;;  %s536_s2 = int_to_ptr.vmem [resolvable:$false] %s535_s2 }
  0x13   : > { %p533_p12 = pnand %p531_p11, %p519_p10  ;;  %s537_s3 = scalar_lea.vmem %s536_s2, 4096 }
  0x14   : > { %p538_p0 = scmp.lt.s32.totalorder %s112_s26, %s536_s2  ;;  %p539_p1 = scmp.lt.s32.totalorder %s537_s3, %s530_s29 }
  0x15   : > { %p534_p13 = pneg %p533_p12 }
  0x16   : > { %p540_p2 = por %p539_p1, %p538_p0 }
  0x18   : > { %p541_p3 = pnand %p540_p2, %p534_p13 }
  0x1a   : > { %544 = shalt.err (!%p541_p3)
}
  0x1b   : > { %s598_s4 = smov 256   ;;  %s599_s5 = smov 16  }
  0x1c   : > { %462 = dma.hbm_to_vmem [thread:$0]  (!%p671_p9), %s110_s24, 2048, %s112_s26, %s99_s28, %s598_s4, %s598_s4, %s599_s5  }
  0x1d   : > { %p449_p4 = scmp.ge.s32.totalorder %s595_s11, 1  ;;  %p119_p5 = scmp.lt.s32.totalorder %s595_s11, 3 }
  0x1f   : > { %p120_p6 = pnand %p449_p4, %p119_p5 }
  0x20   : > { %s125_s6 = sand.u32 (!%p120_p6), 1, %s579_s7  }
  0x21   : > { %123 = sbr.rel (%p120_p6) target bundleno = 327 (0x147), region = 24  ;;  %s450_s12 = sshll.u32 (!%p120_p6), %s125_s6, 7 }
  0x22   : > { %s126_s14 = scalar_lea.sflag (!%p120_p6), [#allocation5], %s125_s6  ;;  %s682_s15 = scalar_lea.vmem (!%p120_p6), [#allocation4], %s450_s12 }
  0x26   : > { %570 = dma.done.wait (%p656_p7), %s126_s14, 2048  }
  0x27   : > { %572 = vsyncadd (%p656_p7), %s126_s14, 4294965248  ;;  %vm158_vm0 = vcmask 7168   ;;  %v600_v0 = vmov -inf   ;;  %v175_v1 = vld [vmem:[%s682_s15] sm:$0xff]  ;;  %v176_v2 = vld [vmem:[%s682_s15 + $0x8] sm:$0xff]  ;;  %v601_v33 = vmov 0.0  }
  0x28   : > { %167 = vst.msk [vmem:[#allocation3] sm:$0xff] %vm158_vm0, %v600_v0  ;;  %168 = vst.msk [vmem:[#allocation3 + $0x8] sm:$0xff] %vm158_vm0, %v600_v0  ;;  %v177_v3 = vld [vmem:[%s682_s15 + $0x10] sm:$0xff]  ;;  %v248_v4 = vmax.f32 %v175_v1, %v176_v2  ;;  %v178_v5 = vld [vmem:[%s682_s15 + $0x18] sm:$0xff]  ;;  %v199_v25 = vadd.f32 %v176_v2, %v175_v1  ;;  %s602_s16 = smov 1   ;;  %p149_p7 = scmp.lt.s32.totalorder %s587_s9, 1 }
  0x29   : > { %169 = vst.msk [vmem:[#allocation3 + $0x10] sm:$0xff] %vm158_vm0, %v600_v0  ;;  %170 = vst.msk [vmem:[#allocation3 + $0x18] sm:$0xff] %vm158_vm0, %v600_v0  ;;  %v179_v6 = vld [vmem:[%s682_s15 + $0x20] sm:$0xff]  ;;  %v180_v7 = vld [vmem:[%s682_s15 + $0x28] sm:$0xff]  ;;  %v251_v11 = vmax.f32 %v177_v3, %v178_v5  ;;  %v202_v26 = vadd.f32 %v178_v5, %v177_v3  ;;  %vm355_vm1 = vcmask 15360  }
  0x2a   : > { %171 = vst.msk [vmem:[#allocation3 + $0x20] sm:$0xff] %vm158_vm0, %v600_v0  ;;  %172 = vst.msk [vmem:[#allocation3 + $0x28] sm:$0xff] %vm158_vm0, %v600_v0  ;;  %v254_v8 = vmax.f32 %v179_v6, %v180_v7  ;;  %v181_v9 = vld [vmem:[%s682_s15 + $0x30] sm:$0xff]  ;;  %v182_v10 = vld [vmem:[%s682_s15 + $0x38] sm:$0xff]  ;;  %249 = vmax.xlane.f32.xlu0 %v248_v4  ;;  %v205_v27 = vadd.f32 %v180_v7, %v179_v6  ;;  %s806_s9 = smov (!%p149_p7, %s587_s9), 1 }
  0x2b   : > { %173 = vst.msk [vmem:[#allocation3 + $0x30] sm:$0xff] %vm158_vm0, %v600_v0  ;;  %174 = vst.msk [vmem:[#allocation3 + $0x38] sm:$0xff] %vm158_vm0, %v600_v0  ;;  %v257_v12 = vmax.f32 %v181_v9, %v182_v10  ;;  %v183_v13 = vld [vmem:[%s682_s15 + $0x40] sm:$0xff]  ;;  %v184_v14 = vld [vmem:[%s682_s15 + $0x48] sm:$0xff]  ;;  %v208_v28 = vadd.f32 %v182_v10, %v181_v9  ;;  %s456_s17 = sshll.u32 %s806_s9, 6 }
  0x2c   : > { %255 = vmax.xlane.f32.xlu1 %v254_v8  ;;  %v185_v15 = vld [vmem:[%s682_s15 + $0x50] sm:$0xff]  ;;  %v186_v16 = vld [vmem:[%s682_s15 + $0x58] sm:$0xff]  ;;  %v260_v17 = vmax.f32 %v183_v13, %v184_v14  ;;  %v187_v19 = vld [vmem:[%s682_s15 + $0x60] sm:$0xff]  ;;  %v211_v29 = vadd.f32 %v184_v14, %v183_v13  ;;  %159 = vst.msk [vmem:[#allocation2] sm:$0xff] %vm158_vm0, %v601_v33  ;;  %s749_s21 = scalar_lea.vmem %s794_s1, %s456_s17 }
  0x2d   : > { %v263_v18 = vmax.f32 %v185_v15, %v186_v16  ;;  %v188_v20 = vld [vmem:[%s682_s15 + $0x68] sm:$0xff]  ;;  %v189_v21 = vld [vmem:[%s682_s15 + $0x70] sm:$0xff]  ;;  %v190_v22 = vld [vmem:[%s682_s15 + $0x78] sm:$0xff]  ;;  %v214_v30 = vadd.f32 %v186_v16, %v185_v15  ;;  %160 = vst.msk [vmem:[#allocation2 + $0x8] sm:$0xff] %vm158_vm0, %v601_v33 }
  0x2e   : > { %252 = vmax.xlane.f32.xlu0 %v251_v11  ;;  %v266_v23 = vmax.f32 %v187_v19, %v188_v20  ;;  %v269_v24 = vmax.f32 %v189_v21, %v190_v22  ;;  %v217_v31 = vadd.f32 %v188_v20, %v187_v19  ;;  %v220_v32 = vadd.f32 %v190_v22, %v189_v21 }
  0x2f   : > { %161 = vst.msk [vmem:[#allocation2 + $0x10] sm:$0xff] %vm158_vm0, %v601_v33  ;;  %162 = vst.msk [vmem:[#allocation2 + $0x18] sm:$0xff] %vm158_vm0, %v601_v33  ;;  %v240_v34 = vld [vmem:[#allocation3] sm:$0xff]  ;;  %v241_v39 = vld [vmem:[#allocation3 + $0x8] sm:$0xff] }
  0x30   : > { %258 = vmax.xlane.f32.xlu1 %v257_v12  ;;  %163 = vst.msk [vmem:[#allocation2 + $0x20] sm:$0xff] %vm158_vm0, %v601_v33  ;;  %164 = vst.msk [vmem:[#allocation2 + $0x28] sm:$0xff] %vm158_vm0, %v601_v33  ;;  %v242_v35 = vld [vmem:[#allocation3 + $0x10] sm:$0xff]  ;;  %v243_v41 = vld [vmem:[#allocation3 + $0x18] sm:$0xff] }
  0x31   : > { %165 = vst.msk [vmem:[#allocation2 + $0x30] sm:$0xff] %vm158_vm0, %v601_v33  ;;  %166 = vst.msk [vmem:[#allocation2 + $0x38] sm:$0xff] %vm158_vm0, %v601_v33  ;;  %v244_v46 = vld [vmem:[#allocation3 + $0x20] sm:$0xff]  ;;  %v245_v47 = vld [vmem:[#allocation3 + $0x28] sm:$0xff] }
  0x32   : > { %261 = vmax.xlane.f32.xlu0 %v260_v17  ;;  %v246_v53 = vld [vmem:[#allocation3 + $0x30] sm:$0xff]  ;;  %v247_v54 = vld [vmem:[#allocation3 + $0x38] sm:$0xff] }
  0x33   : > { %v191_v60 = vld [vmem:[#allocation2] sm:$0xff] }
  0x34   : > { %264 = vmax.xlane.f32.xlu1 %v263_v18  ;;  %v192_v61 = vld [vmem:[#allocation2 + $0x8] sm:$0xff] }
  0x36   : > { %267 = vmax.xlane.f32.xlu0 %v266_v23  ;;  %v193_v4 = vld [vmem:[#allocation2 + $0x10] sm:$0xff]  ;;  %v194_v5 = vld [vmem:[#allocation2 + $0x18] sm:$0xff] }
  0x37   : > { %v195_v12 = vld [vmem:[#allocation2 + $0x20] sm:$0xff]  ;;  %v196_v13 = vld [vmem:[#allocation2 + $0x28] sm:$0xff] }
  0x38   : > { %270 = vmax.xlane.f32.xlu1 %v269_v24  ;;  %v197_v19 = vld [vmem:[#allocation2 + $0x30] sm:$0xff]  ;;  %v198_v20 = vld [vmem:[#allocation2 + $0x38] sm:$0xff] }
  0x3a   : > { %200 = vadd.xlane.f32.xlu0 %v199_v25 }
  0x3c   : > { %203 = vadd.xlane.f32.xlu1 %v202_v26 }
  0x3e   : > { %206 = vadd.xlane.f32.xlu0 %v205_v27 }
  0x40   : > { %209 = vadd.xlane.f32.xlu1 %v208_v28 }
  0x42   : > { %212 = vadd.xlane.f32.xlu0 %v211_v29 }
  0x44   : > { %215 = vadd.xlane.f32.xlu1 %v214_v30 }
  0x46   : > { %218 = vadd.xlane.f32.xlu0 %v217_v31 }
  0x48   : > { %221 = vadd.xlane.f32.xlu1 %v220_v32 }
  0xb3   : > { %v250_v36 = vpop.xlane.xlu0 %249 }
  0xb4   : > { %v272_v37 = vmax.f32 %v240_v34, %v250_v36 }
  0xb5   : > { %v256_v38 = vpop.xlane.xlu1 %255 }
  0xb6   : > { %v274_v40 = vmax.f32 %v242_v35, %v256_v38  ;;  %280 = vst.msk [vmem:[#allocation3] sm:$0xff] %vm158_vm0, %v272_v37 }
  0xb7   : > { %v253_v42 = vpop.xlane.xlu0 %252 }
  0xb8   : > { %282 = vst.msk [vmem:[#allocation3 + $0x10] sm:$0xff] %vm158_vm0, %v274_v40  ;;  %v273_v43 = vmax.f32 %v241_v39, %v253_v42 }
  0xb9   : > { %v259_v44 = vpop.xlane.xlu1 %258 }
  0xba   : > { %v275_v45 = vmax.f32 %v243_v41, %v259_v44  ;;  %281 = vst.msk [vmem:[#allocation3 + $0x8] sm:$0xff] %vm158_vm0, %v273_v43 }
  0xbb   : > { %v262_v48 = vpop.xlane.xlu0 %261 }
  0xbc   : > { %283 = vst.msk [vmem:[#allocation3 + $0x18] sm:$0xff] %vm158_vm0, %v275_v45  ;;  %v276_v50 = vmax.f32 %v244_v46, %v262_v48 }
  0xbd   : > { %v265_v49 = vpop.xlane.xlu1 %264  ;;  %v307_v51 = vld [vmem:[#allocation3] sm:$0xff] }
  0xbe   : > { %v277_v52 = vmax.f32 %v245_v47, %v265_v49  ;;  %323 = vrot.lane.b32.xlu0 %v307_v51, %s602_s16  ;;  %284 = vst.msk [vmem:[#allocation3 + $0x20] sm:$0xff] %vm158_vm0, %v276_v50 }
  0xbf   : > { %v268_v55 = vpop.xlane.xlu0 %267  ;;  %v309_v62 = vld [vmem:[#allocation3 + $0x10] sm:$0xff] }
  0xc0   : > { %285 = vst.msk [vmem:[#allocation3 + $0x28] sm:$0xff] %vm158_vm0, %v277_v52  ;;  %v278_v57 = vmax.f32 %v246_v53, %v268_v55 }
  0xc1   : > { %v271_v56 = vpop.xlane.xlu1 %270  ;;  %v308_v58 = vld [vmem:[#allocation3 + $0x8] sm:$0xff] }
  0xc2   : > { %v279_v59 = vmax.f32 %v247_v54, %v271_v56  ;;  %325 = vrot.lane.b32.xlu1 %v308_v58, %s602_s16  ;;  %286 = vst.msk [vmem:[#allocation3 + $0x30] sm:$0xff] %vm158_vm0, %v278_v57 }
  0xc3   : > { %v201_v63 = vpop.xlane.xlu0 %200  ;;  %v310_v6 = vld [vmem:[#allocation3 + $0x18] sm:$0xff] }
  0xc4   : > { %287 = vst.msk [vmem:[#allocation3 + $0x38] sm:$0xff] %vm158_vm0, %v279_v59  ;;  %v223_v0 = vadd.f32 %v201_v63, %v191_v60 }
  0xc5   : > { %v204_v1 = vpop.xlane.xlu1 %203  ;;  %v311_v2 = vld [vmem:[#allocation3 + $0x20] sm:$0xff] }
  0xc6   : > { %v224_v3 = vadd.f32 %v204_v1, %v192_v61  ;;  %327 = vrot.lane.b32.xlu1 %v309_v62, %s602_s16  ;;  %331 = vrot.lane.b32.xlu0 %v311_v2, %s602_s16  ;;  %232 = vst.msk [vmem:[#allocation2] sm:$0xff] %vm158_vm0, %v223_v0 }
  0xc7   : > { %v207_v7 = vpop.xlane.xlu0 %206  ;;  %v312_v14 = vld [vmem:[#allocation3 + $0x28] sm:$0xff] }
  0xc8   : > { %233 = vst.msk [vmem:[#allocation2 + $0x8] sm:$0xff] %vm158_vm0, %v224_v3  ;;  %v225_v8 = vadd.f32 %v207_v7, %v193_v4 }
  0xc9   : > { %v210_v9 = vpop.xlane.xlu1 %209  ;;  %v313_v10 = vld [vmem:[#allocation3 + $0x30] sm:$0xff] }
  0xca   : > { %v226_v11 = vadd.f32 %v210_v9, %v194_v5  ;;  %329 = vrot.lane.b32.xlu1 %v310_v6, %s602_s16  ;;  %335 = vrot.lane.b32.xlu0 %v313_v10, %s602_s16  ;;  %234 = vst.msk [vmem:[#allocation2 + $0x10] sm:$0xff] %vm158_vm0, %v225_v8 }
  0xcb   : > { %v213_v15 = vpop.xlane.xlu0 %212  ;;  %v314_v21 = vld [vmem:[#allocation3 + $0x38] sm:$0xff] }
  0xcc   : > { %235 = vst.msk [vmem:[#allocation2 + $0x18] sm:$0xff] %vm158_vm0, %v226_v11  ;;  %v227_v16 = vadd.f32 %v213_v15, %v195_v12 }
  0xcd   : > { %v216_v17 = vpop.xlane.xlu1 %215  ;;  %v291_v26 = vld [vmem:[#allocation2] sm:$0xff] }
  0xce   : > { %v228_v18 = vadd.f32 %v216_v17, %v196_v13  ;;  %333 = vrot.lane.b32.xlu1 %v312_v14, %s602_s16  ;;  %236 = vst.msk [vmem:[#allocation2 + $0x20] sm:$0xff] %vm158_vm0, %v227_v16  ;;  %v299_v27 = vmul.f32 0.00390625, %v291_v26 }
  0xcf   : > { %v219_v22 = vpop.xlane.xlu0 %218  ;;  %v292_v29 = vld [vmem:[#allocation2 + $0x8] sm:$0xff] }
  0xd0   : > { %237 = vst.msk [vmem:[#allocation2 + $0x28] sm:$0xff] %vm158_vm0, %v228_v18  ;;  %v229_v23 = vadd.f32 %v219_v22, %v197_v19  ;;  %v300_v33 = vmul.f32 0.00390625, %v292_v29 }
  0xd1   : > { %v222_v24 = vpop.xlane.xlu1 %221  ;;  %v293_v31 = vld [vmem:[#allocation2 + $0x10] sm:$0xff] }
  0xd2   : > { %v230_v25 = vadd.f32 %v222_v24, %v198_v20  ;;  %337 = vrot.lane.b32.xlu1 %v314_v21, %s602_s16  ;;  %238 = vst.msk [vmem:[#allocation2 + $0x30] sm:$0xff] %vm158_vm0, %v229_v23  ;;  %v301_v36 = vmul.f32 0.00390625, %v293_v31 }
  0xd3   : > { %v294_v40 = vld [vmem:[#allocation2 + $0x18] sm:$0xff] }
  0xd4   : > { %239 = vst.msk [vmem:[#allocation2 + $0x38] sm:$0xff] %vm158_vm0, %v230_v25  ;;  %v302_v45 = vmul.f32 0.00390625, %v294_v40 }
  0xd5   : > { %v295_v32 = vld [vmem:[#allocation2 + $0x20] sm:$0xff] }
  0xd6   : > { %v303_v37 = vmul.f32 0.00390625, %v295_v32 }
  0xd7   : > { %v296_v47 = vld [vmem:[#allocation2 + $0x28] sm:$0xff] }
  0xd8   : > { %v304_v51 = vmul.f32 0.00390625, %v296_v47 }
  0xd9   : > { %v297_v38 = vld [vmem:[#allocation2 + $0x30] sm:$0xff] }
  0xda   : > { %v305_v44 = vmul.f32 0.00390625, %v297_v38 }
  0xdb   : > { %v298_v53 = vld [vmem:[#allocation2 + $0x38] sm:$0xff] }
  0xdc   : > { %v306_v55 = vmul.f32 0.00390625, %v298_v53 }
 0x130   : > { %v324_v28 = vpop.permute.xlu0 %323 }
 0x131   : > { %v347_v30 = vsel %vm158_vm0, %v299_v27, %v324_v28 }
 0x132   : > { %356 = vst.msk [vmem:[%s749_s21] sm:$0xff] %vm355_vm1, %v347_v30 }
 0x134   : > { %v326_v34 = vpop.permute.xlu1 %325 }
 0x135   : > { %v348_v35 = vsel %vm158_vm0, %v300_v33, %v326_v34 }
 0x136   : > { %357 = vst.msk [vmem:[%s749_s21 + $0x8] sm:$0xff] %vm355_vm1, %v348_v35 }
 0x138   : > { %v328_v39 = vpop.permute.xlu1 %327  ;;  %v332_v41 = vpop.permute.xlu0 %331 }
 0x139   : > { %v349_v42 = vsel %vm158_vm0, %v301_v36, %v328_v39  ;;  %v351_v43 = vsel %vm158_vm0, %v303_v37, %v332_v41 }
 0x13a   : > { %358 = vst.msk [vmem:[%s749_s21 + $0x10] sm:$0xff] %vm355_vm1, %v349_v42  ;;  %360 = vst.msk [vmem:[%s749_s21 + $0x20] sm:$0xff] %vm355_vm1, %v351_v43 }
 0x13c   : > { %v330_v46 = vpop.permute.xlu1 %329  ;;  %v336_v48 = vpop.permute.xlu0 %335 }
 0x13d   : > { %v350_v49 = vsel %vm158_vm0, %v302_v45, %v330_v46  ;;  %v353_v50 = vsel %vm158_vm0, %v305_v44, %v336_v48 }
 0x13e   : > { %359 = vst.msk [vmem:[%s749_s21 + $0x18] sm:$0xff] %vm355_vm1, %v350_v49  ;;  %362 = vst.msk [vmem:[%s749_s21 + $0x30] sm:$0xff] %vm355_vm1, %v353_v50 }
 0x140   : > { %v334_v52 = vpop.permute.xlu1 %333 }
 0x141   : > { %v352_v54 = vsel %vm158_vm0, %v304_v51, %v334_v52 }
 0x142   : > { %361 = vst.msk [vmem:[%s749_s21 + $0x28] sm:$0xff] %vm355_vm1, %v352_v54 }
 0x144   : > { %v338_v56 = vpop.permute.xlu1 %337 }
 0x145   : > { %v354_v57 = vsel %vm158_vm0, %v306_v55, %v338_v56 }
 0x146   : > { %363 = vst.msk [vmem:[%s749_s21 + $0x38] sm:$0xff] %vm355_vm1, %v354_v57 }
 0x147 PF: > { %s14_s11 = sadd.s32 1, %s595_s11   ;;  %s798_s6 = smov %s579_s7 }
 0x148   : > { %p11_p8 = scmp.ge.s32.totalorder %s14_s11, 4   ;;  %s799_s7 = smov %s583_s8 }
 0x149   : > { %s800_s8 = smov %s662_s18  ;;  %s801_s9 = smov %s591_s10 }
 0x14a   : > { %s802_s10 = smov %s804_s13  ;;  %13 = sbr.rel (!%p11_p8) target bundleno = 4 (0x4), region = 72 }
 0x14f   :  { %385 = vsyncpa [#allocation5], 1 }
 0x150   :  { %387 = vsyncpa [#allocation5 + $0x1], 1 }

</bundles_post_ra>
